<compile_context>
chip_gen: v7x
topology: tpu7x:2x2x1
jax: 0.10.0
libtpu: 0.0.40
codegen_flags: <defaults>
</compile_context>

<pallas_src>
import functools

import jax
import jax.numpy as jnp
from jax.experimental import pallas as pl
from jax.experimental.pallas import tpu as pltpu


_LANE = 128
_TARGET_BLOCK_BYTES = 2 * 1024 * 1024  # per input, per pipeline buffer


def _dice_sums_kernel(x_ref, t_ref, inter_ref, sum_ref, *, d, tile_d,
                      k_per_part, need_mask):
    k = pl.program_id(1)

    # Resident accumulators across the (innermost, "arbitrary") reduction axis.
    @pl.when(k == 0)
    def _():
        inter_ref[...] = jnp.zeros_like(inter_ref)
        sum_ref[...] = jnp.zeros_like(sum_ref)

    x = x_ref[...].astype(jnp.float32)
    t = t_ref[...].astype(jnp.float32)

    if need_mask:
        # Mask lanes past the true reduction length d (tail tile and any
        # redundant "ghost" tile from the 2-way partition split).
        tile_idx = pl.program_id(0) * k_per_part + k
        lane = jax.lax.broadcasted_iota(jnp.int32, x_ref.shape, 1)
        valid = tile_idx * tile_d + lane < d
        x = jnp.where(valid, x, 0.0)
        t = jnp.where(valid, t, 0.0)

    inter_ref[...] += jnp.sum(x * t, axis=1, keepdims=True)[None]
    sum_ref[...] += jnp.sum(x + t, axis=1, keepdims=True)[None]


@functools.partial(jax.jit, static_argnames=("tile_d",))
def multiclass_dice_loss(inputs, target, tile_d=None):
    """Pallas implementation of MulticlassDiceLoss.forward (smooth = 1)."""
    n, c = target.shape[0], target.shape[1]
    x = inputs.reshape(n * c, -1)   # (N*C, H*W)
    t = target.reshape(n * c, -1)
    rows, d = x.shape
    itemsize = max(x.dtype.itemsize, t.dtype.itemsize)

    # Tile selection: big lane-aligned tiles, bounded by a per-block byte
    # budget so the double-buffered working set fits scoped VMEM everywhere.
    d_aligned = pl.cdiv(d, _LANE) * _LANE
    if tile_d is None:
        tile_d = _TARGET_BLOCK_BYTES // max(1, rows * itemsize)
    tile_d = max(_LANE, (tile_d // _LANE) * _LANE)
    tile_d = min(tile_d, d_aligned)

    num_tiles = pl.cdiv(d, tile_d)
    num_parts = 2 if num_tiles >= 2 else 1      # shard across both TCs on v7x
    k_per_part = pl.cdiv(num_tiles, num_parts)

    if num_parts * k_per_part == num_tiles:
        in_map = lambda p, k: (0, p * k_per_part + k)
    else:
        # Odd tile count: clamp the last (ghost) block; the in-kernel lane
        # mask zeroes its contribution.
        last = num_tiles - 1
        in_map = lambda p, k: (0, jnp.minimum(p * k_per_part + k, last))

    need_mask = (num_parts * k_per_part * tile_d) != d

    in_spec = pl.BlockSpec((rows, tile_d), in_map)
    out_spec = pl.BlockSpec((1, rows, 1), lambda p, k: (p, 0, 0))
    out_sds = jax.ShapeDtypeStruct((num_parts, rows, 1), jnp.float32)

    kernel = functools.partial(
        _dice_sums_kernel,
        d=d, tile_d=tile_d, k_per_part=k_per_part, need_mask=need_mask)

    inter, s = pl.pallas_call(
        kernel,
        out_shape=(out_sds, out_sds),
        grid_spec=pltpu.PrefetchScalarGridSpec(
            num_scalar_prefetch=0,
            grid=(num_parts, k_per_part),
            in_specs=[in_spec, in_spec],
            out_specs=[out_spec, out_spec],
        ),
        compiler_params=pltpu.CompilerParams(
            dimension_semantics=("parallel", "arbitrary"),
            vmem_limit_bytes=32 * 1024 * 1024,  # explicit, safe on v5e..v7x
        ),
        cost_estimate=pl.CostEstimate(
            flops=3 * rows * d,
            transcendentals=0,
            bytes_accessed=rows * d * (x.dtype.itemsize + t.dtype.itemsize)
            + 2 * num_parts * rows * 4,
        ),
    )(x, t)

    # Tiny scalar epilogue in plain JAX.
    inter = jnp.sum(inter, axis=0)[:, 0].reshape(n, c)   # per (sample, class)
    s = jnp.sum(s, axis=0)[:, 0].reshape(n, c)           # sum(x) + sum(t)

    smooth = 1.0
    dice = (2.0 * inter + smooth) / (s + smooth)          # (n, c)
    per_class_loss = 1.0 - jnp.sum(dice, axis=0) / n      # (c,)
    return (jnp.sum(per_class_loss) / c).astype(jnp.float32)


def _reference(inputs, target):
    n, c = target.shape[0], target.shape[1]
    x = inputs.reshape(n, c, -1).astype(jnp.float32)
    t = target.reshape(n, c, -1).astype(jnp.float32)
    inter = jnp.sum(x * t, axis=-1)
    dice = (2.0 * inter + 1.0) / (jnp.sum(x, -1) + jnp.sum(t, -1) + 1.0)
    per_class = 1.0 - jnp.sum(dice, axis=0) / n
    return jnp.sum(per_class) / c


if __name__ == "__main__":
    key = jax.random.PRNGKey(0)
    k1, k2 = jax.random.split(key)
    # NCHW inputs, as the PyTorch module would receive from a segmentation net.
    x = jax.nn.sigmoid(jax.random.normal(k1, (2, 4, 16, 16), dtype=jnp.float32))
    tgt = (jax.random.uniform(k2, (2, 4, 16, 16)) > 0.5).astype(jnp.float32)

    out = multiclass_dice_loss(x, tgt)
    jax.block_until_ready(out)

    ref = _reference(x, tgt)
    assert jnp.allclose(out, ref, atol=1e-5, rtol=1e-5), (out, ref)
    print("KERNEL_OK")
</pallas_src>

<mosaic_0001>
module attributes {stable_mosaic.version = 11 : i64} {
  func.func @_dice_sums_kernel(%arg0: i32, %arg1: i32, %arg2: memref<8x256xf32, #tpu.memory_space<vmem>>, %arg3: memref<8x256xf32, #tpu.memory_space<vmem>>, %arg4: memref<1x8x1xf32, #tpu.memory_space<vmem>>, %arg5: memref<1x8x1xf32, #tpu.memory_space<vmem>>) attributes {dimension_semantics = [#tpu.dimension_semantics<parallel>, #tpu.dimension_semantics<arbitrary>], iteration_bounds = array<i64: 1, 1>, scalar_prefetch = 0 : i64, scratch_operands = 0 : i64, tpu.core_type = #tpu.core_type<tc>, window_params = [{transform_indices = @transform_0, window_bounds = array<i64: 8, 256>}, {transform_indices = @transform_1, window_bounds = array<i64: 8, 256>}, {transform_indices = @transform_2, window_bounds = array<i64: 1, 8, 1>}, {transform_indices = @transform_3, window_bounds = array<i64: 1, 8, 1>}]} {
    %c0_i32 = arith.constant 0 : i32
    %0 = arith.cmpi eq, %arg1, %c0_i32 : i32
    %1 = arith.extui %0 : i1 to i32
    %c0_i32_0 = arith.constant 0 : i32
    %2 = arith.cmpi ne, %1, %c0_i32_0 : i32
    scf.if %2 {
      %cst_17 = arith.constant 0.000000e+00 : f32
      %19 = vector.broadcast %cst_17 : f32 to vector<1x8x1xf32>
      %c0_18 = arith.constant 0 : index
      %c0_19 = arith.constant 0 : index
      %c0_20 = arith.constant 0 : index
      %20 = vector.load %arg4[%c0_18, %c0_19, %c0_20] : memref<1x8x1xf32, #tpu.memory_space<vmem>>, vector<1x8x1xf32>
      tpu.vector_store %arg4[%c0_18, %c0_19, %c0_20], %19 {strides = array<i32>} : memref<1x8x1xf32, #tpu.memory_space<vmem>>, vector<1x8x1xf32>,
      %cst_21 = arith.constant 0.000000e+00 : f32
      %21 = vector.broadcast %cst_21 : f32 to vector<1x8x1xf32>
      %c0_22 = arith.constant 0 : index
      %c0_23 = arith.constant 0 : index
      %c0_24 = arith.constant 0 : index
      %22 = vector.load %arg5[%c0_22, %c0_23, %c0_24] : memref<1x8x1xf32, #tpu.memory_space<vmem>>, vector<1x8x1xf32>
      tpu.vector_store %arg5[%c0_22, %c0_23, %c0_24], %21 {strides = array<i32>} : memref<1x8x1xf32, #tpu.memory_space<vmem>>, vector<1x8x1xf32>,
    } else {
    }
    %c0 = arith.constant 0 : index
    %c0_1 = arith.constant 0 : index
    %3 = vector.load %arg2[%c0, %c0_1] : memref<8x256xf32, #tpu.memory_space<vmem>>, vector<8x256xf32>
    %c0_2 = arith.constant 0 : index
    %c0_3 = arith.constant 0 : index
    %4 = vector.load %arg3[%c0_2, %c0_3] : memref<8x256xf32, #tpu.memory_space<vmem>>, vector<8x256xf32>
    %c0_4 = arith.constant 0 : index
    %c0_5 = arith.constant 0 : index
    %c0_6 = arith.constant 0 : index
    %5 = vector.load %arg4[%c0_4, %c0_5, %c0_6] : memref<1x8x1xf32, #tpu.memory_space<vmem>>, vector<1x8x1xf32>
    %6 = arith.mulf %3, %4 : vector<8x256xf32>
    %cst = arith.constant dense<0.000000e+00> : vector<8xf32>
    %7 = vector.multi_reduction <add>, %6, %cst [1] : vector<8x256xf32> to vector<8xf32>
    %8 = vector.shape_cast %7 : vector<8xf32> to vector<8x1xf32>
    %9 = vector.shape_cast %8 : vector<8x1xf32> to vector<1x8x1xf32>
    %10 = arith.addf %5, %9 : vector<1x8x1xf32>
    %c0_7 = arith.constant 0 : index
    %c0_8 = arith.constant 0 : index
    %c0_9 = arith.constant 0 : index
    %11 = vector.load %arg4[%c0_7, %c0_8, %c0_9] : memref<1x8x1xf32, #tpu.memory_space<vmem>>, vector<1x8x1xf32>
    tpu.vector_store %arg4[%c0_7, %c0_8, %c0_9], %10 {strides = array<i32>} : memref<1x8x1xf32, #tpu.memory_space<vmem>>, vector<1x8x1xf32>,
    %c0_10 = arith.constant 0 : index
    %c0_11 = arith.constant 0 : index
    %c0_12 = arith.constant 0 : index
    %12 = vector.load %arg5[%c0_10, %c0_11, %c0_12] : memref<1x8x1xf32, #tpu.memory_space<vmem>>, vector<1x8x1xf32>
    %13 = arith.addf %3, %4 : vector<8x256xf32>
    %cst_13 = arith.constant dense<0.000000e+00> : vector<8xf32>
    %14 = vector.multi_reduction <add>, %13, %cst_13 [1] : vector<8x256xf32> to vector<8xf32>
    %15 = vector.shape_cast %14 : vector<8xf32> to vector<8x1xf32>
    %16 = vector.shape_cast %15 : vector<8x1xf32> to vector<1x8x1xf32>
    %17 = arith.addf %12, %16 : vector<1x8x1xf32>
    %c0_14 = arith.constant 0 : index
    %c0_15 = arith.constant 0 : index
    %c0_16 = arith.constant 0 : index
    %18 = vector.load %arg5[%c0_14, %c0_15, %c0_16] : memref<1x8x1xf32, #tpu.memory_space<vmem>>, vector<1x8x1xf32>
    tpu.vector_store %arg5[%c0_14, %c0_15, %c0_16], %17 {strides = array<i32>} : memref<1x8x1xf32, #tpu.memory_space<vmem>>, vector<1x8x1xf32>,
    return
  }
  func.func @transform_0(%arg0: i32, %arg1: i32) -> (i32, i32) {
    %c1_i32 = arith.constant 1 : i32
    %0 = arith.muli %arg0, %c1_i32 : i32
    %1 = arith.addi %0, %arg1 : i32
    %c0_i32 = arith.constant 0 : i32
    %c0_i32_0 = arith.constant 0 : i32
    return %c0_i32, %1 : i32, i32
  }
  func.func @transform_1(%arg0: i32, %arg1: i32) -> (i32, i32) {
    %c1_i32 = arith.constant 1 : i32
    %0 = arith.muli %arg0, %c1_i32 : i32
    %1 = arith.addi %0, %arg1 : i32
    %c0_i32 = arith.constant 0 : i32
    %c0_i32_0 = arith.constant 0 : i32
    return %c0_i32, %1 : i32, i32
  }
  func.func @transform_2(%arg0: i32, %arg1: i32) -> (i32, i32, i32) {
    %c0_i32 = arith.constant 0 : i32
    %c0_i32_0 = arith.constant 0 : i32
    %c0_i32_1 = arith.constant 0 : i32
    return %arg0, %c0_i32, %c0_i32_0 : i32, i32, i32
  }
  func.func @transform_3(%arg0: i32, %arg1: i32) -> (i32, i32, i32) {
    %c0_i32 = arith.constant 0 : i32
    %c0_i32_0 = arith.constant 0 : i32
    %c0_i32_1 = arith.constant 0 : i32
    return %arg0, %c0_i32, %c0_i32_0 : i32, i32, i32
  }
}

</mosaic_0001>

<bundles_post_ra>
// kernel: multiclass_dice_loss.1
= control target key start
LH: loop header
LB: loop body
LE: loop exit
PB: predicated region body
PF: predicated region fallthrough
CT: control target
= control target key end

     0   :  { %vm61_vm0 = vcmask 7168   ;;  %v106_v3 = vmov 0.0   ;;  %s161_s0 = inlined_call_operand.vmem [shape: f32[8,256], index: 0, kind: input, shape index: {}]   ;;  %s162_s1 = inlined_call_operand.vmem [shape: f32[8,256], index: 1, kind: input, shape index: {}]   ;;  %s163_s2 = inlined_call_operand.vmem [shape: f32[1,8,1], index: 2, kind: output, shape index: {0}]   ;;  %s164_s3 = inlined_call_operand.vmem [shape: f32[1,8,1], index: 3, kind: output, shape index: {1}]  }
   0x1   :  { %v64_v0 = vld [vmem:[%s161_s0] sm:$0xff]  ;;  %v65_v1 = vld [vmem:[%s161_s0 + $0x8] sm:$0xff]  ;;  %62 = vst.msk [vmem:[%s163_s2] sm:$0xff] %vm61_vm0, %v106_v3  ;;  %63 = vst.msk [vmem:[%s164_s3] sm:$0xff] %vm61_vm0, %v106_v3 }
   0x2   :  { %v66_v2 = vld [vmem:[%s162_s1] sm:$0xff]  ;;  %v67_v4 = vld [vmem:[%s162_s1 + $0x8] sm:$0xff] }
   0x3   :  { %v69_v5 = vmul.f32 %v66_v2, %v64_v0  ;;  %v70_v6 = vmul.f32 %v67_v4, %v65_v1  ;;  %v78_v7 = vadd.f32 %v66_v2, %v64_v0  ;;  %v79_v8 = vadd.f32 %v67_v4, %v65_v1 }
   0x5   :  { %v71_v9 = vadd.f32 %v70_v6, %v69_v5  ;;  %v80_v10 = vadd.f32 %v79_v8, %v78_v7 }
   0x7   :  { %72 = vadd.xlane.f32.xlu0 %v71_v9 }
   0x8   :  { %v68_v11 = vld [vmem:[%s163_s2] sm:$0xff] }
   0x9   :  { %v77_v14 = vld [vmem:[%s164_s3] sm:$0xff] }
   0xb   :  { %81 = vadd.xlane.f32.xlu0 %v80_v10 }
  0x94   :  { %v73_v12 = vpop.xlane.xlu0 %72 }
  0x95   :  { %v74_v13 = vadd.f32 %v73_v12, %v68_v11 }
  0x97   :  { %76 = vst.msk [vmem:[%s163_s2] sm:$0xff] %vm61_vm0, %v74_v13 }
  0x98   :  { %v82_v15 = vpop.xlane.xlu0 %81 }
  0x99   :  { %v83_v16 = vadd.f32 %v82_v15, %v77_v14 }
  0x9b   :  { %84 = vst.msk [vmem:[%s164_s3] sm:$0xff] %vm61_vm0, %v83_v16 }

</bundles_post_ra>
